<compile_context>
chip_gen: v7x
topology: tpu7x:2x2x1
jax: 0.10.0
libtpu: 0.0.40
codegen_flags: <defaults>
</compile_context>

<pallas_src>
import jax
import jax.numpy as jnp
from jax.experimental import pallas as pl
from jax.experimental.pallas import tpu as pltpu


def _round_up(x, m):
    return ((x + m - 1) // m) * m


def simple_llm_kernel(ids_ref, emb_ref, w1_ref, b1_ref, w2_ref, b2_ref,
                      out_ref, h_ref):
    """Produces one (TM tokens) x (TN vocab) logits tile.

    Grid = (N_tiles, V_tiles). The hidden activations for the current token
    tile are computed once (first V step) into the persistent VMEM scratch
    `h_ref`; every V step then runs a single (TM,Hp) x (Hp,TN) MXU matmul.
    """
    vj = pl.program_id(1)

    @pl.when(vj == 0)
    def _compute_hidden():
        ids = ids_ref[...]                                    # (TM, 1) int32
        tm = ids.shape[0]
        vp = emb_ref.shape[0]
        # Embedding lookup as a one-hot matmul. Fine while the (padded) vocab
        # is tiny and VMEM-resident; out-of-range ids yield a zero embedding.
        # TODO(synk): for production vocab sizes (V >= a few hundred), replace
        # this with a scalar-prefetch / DMA row gather instead of one-hot.
        one_hot = (jax.lax.broadcasted_iota(jnp.int32, (tm, vp), 1) == ids)
        one_hot = one_hot.astype(emb_ref.dtype)
        x = jnp.dot(one_hot, emb_ref[...],
                    preferred_element_type=jnp.float32)       # (TM, Ep) f32
        # fc1 + bias + ReLU: bf16 operands, f32 accumulation. Cast of x back
        # to bf16 is lossless (rows of a bf16 table picked by one-hot).
        h = jnp.dot(x.astype(w1_ref.dtype), w1_ref[...],
                    preferred_element_type=jnp.float32) + b1_ref[...]
        h_ref[...] = jnp.maximum(h, 0.0).astype(h_ref.dtype)  # (TM, Hp)

    # fc2 for this vocab tile; bias broadcast once per output tile.
    logits = jnp.dot(h_ref[...], w2_ref[...],
                     preferred_element_type=jnp.float32) + b2_ref[...]
    out_ref[...] = logits.astype(out_ref.dtype)


def simple_llm_forward(ids, emb, w1, b1, w2, b2, *,
                       tm=128, tn=128, compute_dtype=jnp.bfloat16):
    """ids: (B, S) ints; returns logits (B, S, V) float32.

    tm (token tile) must be a multiple of 8, tn (vocab tile) a multiple of
    128; use 256-aligned tiles for real shapes on v6e/v7x.
    """
    B, S = ids.shape
    N = B * S
    V, E = emb.shape
    E2, H = w1.shape
    assert E2 == E and w2.shape == (H, V)
    assert b1.shape == (H,) and b2.shape == (V,)

    # Lane/sublane-aligned padded sizes (done once, in the wrapper).
    Np = _round_up(N, tm)
    Ep = _round_up(E, 128)
    Hp = _round_up(H, 128)
    Vp = _round_up(V, tn)

    ids_p = jnp.zeros((Np, 1), jnp.int32).at[:N, 0].set(
        ids.reshape(N).astype(jnp.int32))
    emb_p = jnp.zeros((Vp, Ep), compute_dtype).at[:V, :E].set(
        emb.astype(compute_dtype))
    w1_p = jnp.zeros((Ep, Hp), compute_dtype).at[:E, :H].set(
        w1.astype(compute_dtype))
    b1_p = jnp.zeros((1, Hp), jnp.float32).at[0, :H].set(
        b1.astype(jnp.float32))
    w2_p = jnp.zeros((Hp, Vp), compute_dtype).at[:H, :V].set(
        w2.astype(compute_dtype))
    b2_p = jnp.zeros((1, Vp), jnp.float32).at[0, :V].set(
        b2.astype(jnp.float32))

    grid = (Np // tm, Vp // tn)

    out = pl.pallas_call(
        simple_llm_kernel,
        out_shape=jax.ShapeDtypeStruct((Np, Vp), jnp.float32),
        grid_spec=pltpu.PrefetchScalarGridSpec(
            num_scalar_prefetch=0,
            grid=grid,
            in_specs=[
                pl.BlockSpec((tm, 1), lambda i, j: (i, 0)),    # token ids tile
                pl.BlockSpec((Vp, Ep), lambda i, j: (0, 0)),   # embedding (resident)
                pl.BlockSpec((Ep, Hp), lambda i, j: (0, 0)),   # fc1 weight (resident)
                pl.BlockSpec((1, Hp), lambda i, j: (0, 0)),    # fc1 bias (resident)
                pl.BlockSpec((Hp, tn), lambda i, j: (0, j)),   # fc2 weight tile
                pl.BlockSpec((1, tn), lambda i, j: (0, j)),    # fc2 bias tile
            ],
            out_specs=pl.BlockSpec((tm, tn), lambda i, j: (i, j)),
            scratch_shapes=[pltpu.VMEM((tm, Hp), compute_dtype)],
        ),
        compiler_params=pltpu.CompilerParams(
            dimension_semantics=("parallel", "arbitrary")),
    )(ids_p, emb_p, w1_p, b1_p, w2_p, b2_p)

    return out[:N, :V].reshape(B, S, V)


if __name__ == "__main__":
    # Mirrors the PyTorch module's config: text = 'hello world'
    text = "hello world"
    chars = sorted(list(set(text)))
    vocab_size = len(chars)          # 8
    embedding_dim = 10
    hidden_dim = 20

    batch, seq = 2, 8

    key = jax.random.PRNGKey(0)
    k_ids, k_emb, k_w1, k_b1, k_w2, k_b2 = jax.random.split(key, 6)

    # Deterministic synthetic parameters (shapes match nn.Embedding / nn.Linear).
    emb = jax.random.normal(k_emb, (vocab_size, embedding_dim), jnp.float32)
    w1 = jax.random.normal(k_w1, (embedding_dim, hidden_dim), jnp.float32) * 0.1
    b1 = jax.random.normal(k_b1, (hidden_dim,), jnp.float32) * 0.1
    w2 = jax.random.normal(k_w2, (hidden_dim, vocab_size), jnp.float32) * 0.1
    b2 = jax.random.normal(k_b2, (vocab_size,), jnp.float32) * 0.1

    ids = jax.random.randint(k_ids, (batch, seq), 0, vocab_size, jnp.int32)

    logits = simple_llm_forward(ids, emb, w1, b1, w2, b2)
    logits = jax.block_until_ready(logits)

    # Pure-JAX reference mirroring the kernel's bf16-operand / f32-accumulate
    # numerics (weights and the post-ReLU hidden activations cast to bf16).
    emb_c = emb.astype(jnp.bfloat16).astype(jnp.float32)
    w1_c = w1.astype(jnp.bfloat16).astype(jnp.float32)
    w2_c = w2.astype(jnp.bfloat16).astype(jnp.float32)
    x_r = emb_c[ids]                                          # (B, S, E)
    h_r = jnp.maximum(x_r @ w1_c + b1, 0.0)                   # (B, S, H)
    h_r = h_r.astype(jnp.bfloat16).astype(jnp.float32)
    ref = h_r @ w2_c + b2                                     # (B, S, V)

    assert logits.shape == (batch, seq, vocab_size)
    max_err = float(jnp.max(jnp.abs(logits - ref)))
    assert jnp.allclose(logits, ref, atol=1e-3, rtol=1e-3), max_err

    print("KERNEL_OK")
</pallas_src>

<mosaic_0001>
module attributes {stable_mosaic.version = 11 : i64} {
  func.func @simple_llm_kernel(%arg0: i32, %arg1: i32, %arg2: memref<128x1xi32, #tpu.memory_space<vmem>>, %arg3: memref<128x128xbf16, #tpu.memory_space<vmem>>, %arg4: memref<128x128xbf16, #tpu.memory_space<vmem>>, %arg5: memref<1x128xf32, #tpu.memory_space<vmem>>, %arg6: memref<128x128xbf16, #tpu.memory_space<vmem>>, %arg7: memref<1x128xf32, #tpu.memory_space<vmem>>, %arg8: memref<128x128xf32, #tpu.memory_space<vmem>>, %arg9: memref<128x128xbf16, #tpu.memory_space<vmem>>) attributes {dimension_semantics = [#tpu.dimension_semantics<parallel>, #tpu.dimension_semantics<arbitrary>], iteration_bounds = array<i64: 1, 1>, scalar_prefetch = 0 : i64, scratch_operands = 1 : i64, tpu.core_type = #tpu.core_type<tc>, window_params = [{transform_indices = @transform_0, window_bounds = array<i64: 128, 1>}, {pipeline_mode = #tpu.pipeline_mode<synchronous>, transform_indices = @transform_1, window_bounds = array<i64: 128, 128>}, {pipeline_mode = #tpu.pipeline_mode<synchronous>, transform_indices = @transform_2, window_bounds = array<i64: 128, 128>}, {pipeline_mode = #tpu.pipeline_mode<synchronous>, transform_indices = @transform_3, window_bounds = array<i64: 1, 128>}, {transform_indices = @transform_4, window_bounds = array<i64: 128, 128>}, {transform_indices = @transform_5, window_bounds = array<i64: 1, 128>}, {transform_indices = @transform_6, window_bounds = array<i64: 128, 128>}]} {
    %c0_i32 = arith.constant 0 : i32
    %0 = arith.cmpi eq, %arg1, %c0_i32 : i32
    %1 = arith.extui %0 : i1 to i32
    %c0_i32_0 = arith.constant 0 : i32
    %2 = arith.cmpi ne, %1, %c0_i32_0 : i32
    scf.if %2 {
      %c0_8 = arith.constant 0 : index
      %c0_9 = arith.constant 0 : index
      %10 = vector.load %arg2[%c0_8, %c0_9] : memref<128x1xi32, #tpu.memory_space<vmem>>, vector<128x1xi32>
      %11 = tpu.iota {dimensions = array<i32: 1>} : vector<128x128xi32>
      %12 = vector.broadcast %10 : vector<128x1xi32> to vector<128x128xi32>
      %13 = arith.cmpi eq, %11, %12 : vector<128x128xi32>
      %14 = arith.extui %13 : vector<128x128xi1> to vector<128x128xi32>
      %15 = arith.sitofp %14 : vector<128x128xi32> to vector<128x128xf32>
      %16 = arith.truncf %15 : vector<128x128xf32> to vector<128x128xbf16>
      %c0_10 = arith.constant 0 : index
      %c0_11 = arith.constant 0 : index
      %17 = vector.load %arg3[%c0_10, %c0_11] : memref<128x128xbf16, #tpu.memory_space<vmem>>, vector<128x128xbf16>
      %cst_12 = arith.constant dense<0.000000e+00> : vector<128x128xf32>
      %18 = tpu.matmul %16, %17, %cst_12 {dimension_numbers = #tpu.dot_dimension_numbers<[1], [0], [0], [1], [0, 0, 1, 1], [], []>} : vector<128x128xbf16>, vector<128x128xbf16>, vector<128x128xf32> -> vector<128x128xf32>
      %19 = arith.truncf %18 : vector<128x128xf32> to vector<128x128xbf16>
      %c0_13 = arith.constant 0 : index
      %c0_14 = arith.constant 0 : index
      %20 = vector.load %arg4[%c0_13, %c0_14] : memref<128x128xbf16, #tpu.memory_space<vmem>>, vector<128x128xbf16>
      %cst_15 = arith.constant dense<0.000000e+00> : vector<128x128xf32>
      %21 = tpu.matmul %19, %20, %cst_15 {dimension_numbers = #tpu.dot_dimension_numbers<[1], [0], [0], [1], [0, 0, 1, 1], [], []>} : vector<128x128xbf16>, vector<128x128xbf16>, vector<128x128xf32> -> vector<128x128xf32>
      %c0_16 = arith.constant 0 : index
      %c0_17 = arith.constant 0 : index
      %22 = vector.load %arg5[%c0_16, %c0_17] : memref<1x128xf32, #tpu.memory_space<vmem>>, vector<1x128xf32>
      %23 = vector.broadcast %22 : vector<1x128xf32> to vector<128x128xf32>
      %24 = arith.addf %21, %23 : vector<128x128xf32>
      %cst_18 = arith.constant 0.000000e+00 : f32
      %25 = vector.broadcast %cst_18 : f32 to vector<128x128xf32>
      %26 = arith.maximumf %24, %25 : vector<128x128xf32>
      %27 = arith.truncf %26 : vector<128x128xf32> to vector<128x128xbf16>
      %c0_19 = arith.constant 0 : index
      %c0_20 = arith.constant 0 : index
      %28 = vector.load %arg9[%c0_19, %c0_20] : memref<128x128xbf16, #tpu.memory_space<vmem>>, vector<128x128xbf16>
      tpu.vector_store %arg9[%c0_19, %c0_20], %27 {strides = array<i32>} : memref<128x128xbf16, #tpu.memory_space<vmem>>, vector<128x128xbf16>,
    } else {
    }
    %c0 = arith.constant 0 : index
    %c0_1 = arith.constant 0 : index
    %3 = vector.load %arg9[%c0, %c0_1] : memref<128x128xbf16, #tpu.memory_space<vmem>>, vector<128x128xbf16>
    %c0_2 = arith.constant 0 : index
    %c0_3 = arith.constant 0 : index
    %4 = vector.load %arg6[%c0_2, %c0_3] : memref<128x128xbf16, #tpu.memory_space<vmem>>, vector<128x128xbf16>
    %cst = arith.constant dense<0.000000e+00> : vector<128x128xf32>
    %5 = tpu.matmul %3, %4, %cst {dimension_numbers = #tpu.dot_dimension_numbers<[1], [0], [0], [1], [0, 0, 1, 1], [], []>} : vector<128x128xbf16>, vector<128x128xbf16>, vector<128x128xf32> -> vector<128x128xf32>
    %c0_4 = arith.constant 0 : index
    %c0_5 = arith.constant 0 : index
    %6 = vector.load %arg7[%c0_4, %c0_5] : memref<1x128xf32, #tpu.memory_space<vmem>>, vector<1x128xf32>
    %7 = vector.broadcast %6 : vector<1x128xf32> to vector<128x128xf32>
    %8 = arith.addf %5, %7 : vector<128x128xf32>
    %c0_6 = arith.constant 0 : index
    %c0_7 = arith.constant 0 : index
    %9 = vector.load %arg8[%c0_6, %c0_7] : memref<128x128xf32, #tpu.memory_space<vmem>>, vector<128x128xf32>
    tpu.vector_store %arg8[%c0_6, %c0_7], %8 {strides = array<i32>} : memref<128x128xf32, #tpu.memory_space<vmem>>, vector<128x128xf32>,
    return
  }
  func.func @transform_0(%arg0: i32, %arg1: i32) -> (i32, i32) {
    %c0_i32 = arith.constant 0 : i32
    %c0_i32_0 = arith.constant 0 : i32
    return %arg0, %c0_i32 : i32, i32
  }
  func.func @transform_1(%arg0: i32, %arg1: i32) -> (i32, i32) {
    %c0_i32 = arith.constant 0 : i32
    %c0_i32_0 = arith.constant 0 : i32
    %c0_i32_1 = arith.constant 0 : i32
    return %c0_i32, %c0_i32_0 : i32, i32
  }
  func.func @transform_2(%arg0: i32, %arg1: i32) -> (i32, i32) {
    %c0_i32 = arith.constant 0 : i32
    %c0_i32_0 = arith.constant 0 : i32
    %c0_i32_1 = arith.constant 0 : i32
    return %c0_i32, %c0_i32_0 : i32, i32
  }
  func.func @transform_3(%arg0: i32, %arg1: i32) -> (i32, i32) {
    %c0_i32 = arith.constant 0 : i32
    %c0_i32_0 = arith.constant 0 : i32
    %c0_i32_1 = arith.constant 0 : i32
    return %c0_i32, %c0_i32_0 : i32, i32
  }
  func.func @transform_4(%arg0: i32, %arg1: i32) -> (i32, i32) {
    %c0_i32 = arith.constant 0 : i32
    %c0_i32_0 = arith.constant 0 : i32
    return %c0_i32, %arg1 : i32, i32
  }
  func.func @transform_5(%arg0: i32, %arg1: i32) -> (i32, i32) {
    %c0_i32 = arith.constant 0 : i32
    %c0_i32_0 = arith.constant 0 : i32
    return %c0_i32, %arg1 : i32, i32
  }
  func.func @transform_6(%arg0: i32, %arg1: i32) -> (i32, i32) {
    %c0_i32 = arith.constant 0 : i32
    return %arg0, %arg1 : i32, i32
  }
}

</mosaic_0001>

<bundles_post_ra>
// kernel: tpu_custom_call.1
= control target key start
LH: loop header
LB: loop body
LE: loop exit
PB: predicated region body
PF: predicated region fallthrough
CT: control target
= control target key end

     0   :  { %11 = vsyncpa [#allocation4], 0  ;;  %s1212_s0 = inlined_call_operand.vmem [shape: s32[128,1], index: 0, kind: input, shape index: {}]   ;;  %s1213_s1 = inlined_call_operand.vmem [shape: bf16[128,128], index: 1, kind: input, shape index: {}]   ;;  %s1214_s2 = inlined_call_operand.vmem [shape: bf16[128,128], index: 2, kind: input, shape index: {}]   ;;  %s1215_s3 = inlined_call_operand.vmem [shape: f32[1,128], index: 3, kind: input, shape index: {}]   ;;  %s1216_s4 = inlined_call_operand.hbm [shape: bf16[128,128], index: 4, kind: input, shape index: {}]   ;;  %s1217_s5 = inlined_call_operand.vmem [shape: f32[1,128], index: 5, kind: input, shape index: {}]   ;;  %s1218_s6 = inlined_call_operand.hbm [shape: f32[128,128], index: 6, kind: output, shape index: {}]  }
   0x1   :  { %12 = vsyncpa [#allocation5], 0  ;;  %s1043_s21 = smov [#allocation3]   ;;  %s995_s25 = scalar_lea.hbm %s1216_s4, 1024 }
   0x2   :  { %s26_s22 = sshll.u32 %s1043_s21, 4  ;;  %p996_p0 = scmp.ne.s32.totalorder %s1216_s4, %s995_s25  ;;  %s27_s22 = int_to_ptr.vmem [resolvable:$true] %s26_s22 }
   0x3   :  { %p999_p1 = scmp.lt.u32.totalorder %s995_s25, %s1216_s4 }
   0x5   :  { %p1001_p2 = pnand %p999_p1, %p996_p0 }
   0x7   :  { %1004 = shalt.err (!%p1001_p2)
}
   0x8   :  { %s1005_s30 = scalar_lea.vmem %s27_s22, 1024  ;;  %p1010_p4 = scmp.lt.s32.totalorder %s27_s22, %s27_s22 }
   0x9   :  { %p1006_p3 = scmp.ne.s32.totalorder %s27_s22, %s1005_s30  ;;  %p1011_p5 = scmp.lt.s32.totalorder %s1005_s30, %s1005_s30 }
   0xb   :  { %p1012_p6 = por %p1011_p5, %p1010_p4 }
   0xd   :  { %p1013_p7 = pnand %p1012_p6, %p1006_p3 }
   0xf   :  { %1016 = shalt.err (!%p1013_p7)
}
  0x10   :  { %s1044_s7 = smov 64   ;;  %s1045_s8 = smov 4  }
  0x11   :  { %32 = dma.hbm_to_vmem [thread:$0]  %s1216_s4, 1024, %s27_s22, [#allocation4], %s1044_s7, %s1044_s7, %s1045_s8  }
  0x12   :  { %1039 = dma.done.wait [#allocation4], 1024  }
  0x13   :  { %1040 = vsyncadd [#allocation4], 4294966272  ;;  %v1046_v0 = vmov 0   ;;  %v45_v1 = vld [vmem:[%s1212_s0 + $0x10] sm:$0xff]  ;;  %v43_v2 = vld [vmem:[%s1212_s0] sm:$0xff]  ;;  %v59_v32 = vlaneseq }
  0x14   :  { %970 = vset.pattern.permute.xlu1 %v1046_v0  ;;  %969 = vset.pattern.permute.xlu0 %v1046_v0  ;;  %v46_v3 = vld [vmem:[%s1212_s0 + $0x18] sm:$0xff]  ;;  %v44_v4 = vld [vmem:[%s1212_s0 + $0x8] sm:$0xff]  ;;  %v47_v6 = vld [vmem:[%s1212_s0 + $0x20] sm:$0xff]  ;;  %v1047_v38 = vmov 1.0|1.0  }
  0x15   :  { %68 = vperm.xlu1 %970, %v45_v1   ;;  %62 = vperm.xlu0 %969, %v43_v2   ;;  %v48_v5 = vld [vmem:[%s1212_s0 + $0x28] sm:$0xff]  ;;  %v971_v7 = vld [vmem:[%s1213_s1] sm:$0xff]   ;;  %v50_v9 = vld [vmem:[%s1212_s0 + $0x38] sm:$0xff]  ;;  %v60_v35 = vand.u32 127, %v59_v32 }
  0x16   :  { %v972_v8 = vld [vmem:[%s1213_s1 + $0x8] sm:$0xff]   ;;  %849 = vmatprep.subr.bf16.mxu0 %v971_v7  ;;  %v49_v10 = vld [vmem:[%s1212_s0 + $0x30] sm:$0xff]  ;;  %v51_v13 = vld [vmem:[%s1212_s0 + $0x40] sm:$0xff] }
  0x17   :  { %850 = vmatpush3.bf16.msra.mxu0 %v971_v7  ;;  %v973_v11 = vld [vmem:[%s1213_s1 + $0x10] sm:$0xff]   ;;  %v52_v12 = vld [vmem:[%s1212_s0 + $0x48] sm:$0xff]  ;;  %v974_v14 = vld [vmem:[%s1213_s1 + $0x18] sm:$0xff]  }
  0x18   :  { %851 = vmatprep.subr.bf16.mxu0 %v972_v8  ;;  %v54_v15 = vld [vmem:[%s1212_s0 + $0x58] sm:$0xff]  ;;  %v53_v16 = vld [vmem:[%s1212_s0 + $0x50] sm:$0xff]  ;;  %v975_v17 = vld [vmem:[%s1213_s1 + $0x20] sm:$0xff]  }
  0x19   :  { %71 = vperm.xlu1 %970, %v46_v3   ;;  %65 = vperm.xlu0 %969, %v44_v4   ;;  %v56_v18 = vld [vmem:[%s1212_s0 + $0x68] sm:$0xff]  ;;  %v55_v19 = vld [vmem:[%s1212_s0 + $0x60] sm:$0xff]  ;;  %v58_v21 = vld [vmem:[%s1212_s0 + $0x78] sm:$0xff] }
  0x1a   :  { %v976_v20 = vld [vmem:[%s1213_s1 + $0x28] sm:$0xff]   ;;  %v57_v22 = vld [vmem:[%s1212_s0 + $0x70] sm:$0xff]  ;;  %v978_v24 = vld [vmem:[%s1213_s1 + $0x38] sm:$0xff]  }
  0x1b   :  { %852 = vmatpush3.bf16.msra.mxu0 %v972_v8  ;;  %v977_v23 = vld [vmem:[%s1213_s1 + $0x30] sm:$0xff]   ;;  %v979_v25 = vld [vmem:[%s1214_s2] sm:$0xff]   ;;  %v980_v26 = vld [vmem:[%s1214_s2 + $0x8] sm:$0xff]  }
  0x1c   :  { %853 = vmatprep.subr.bf16.mxu0 %v973_v11  ;;  %881 = vmatprep.subr.bf16.mxu1 %v979_v25  ;;  %v981_v27 = vld [vmem:[%s1214_s2 + $0x10] sm:$0xff]   ;;  %v982_v28 = vld [vmem:[%s1214_s2 + $0x18] sm:$0xff]   ;;  %v983_v29 = vld [vmem:[%s1214_s2 + $0x20] sm:$0xff]  }
  0x1d   :  { %77 = vperm.xlu1 %970, %v48_v5   ;;  %74 = vperm.xlu0 %969, %v47_v6   ;;  %v984_v30 = vld [vmem:[%s1214_s2 + $0x28] sm:$0xff]   ;;  %v985_v31 = vld [vmem:[%s1214_s2 + $0x30] sm:$0xff]   ;;  %v986_v51 = vld [vmem:[%s1214_s2 + $0x38] sm:$0xff]  }
  0x1e   :  { %882 = vmatpush3.bf16.msra.mxu1 %v979_v25  ;;  %v987_v52 = vld [vmem:[#allocation3] sm:$0xff]   ;;  %v988_v53 = vld [vmem:[#allocation3 + $0x8] sm:$0xff]   ;;  %v989_v54 = vld [vmem:[#allocation3 + $0x10] sm:$0xff]  }
  0x1f   :  { %854 = vmatpush3.bf16.msra.mxu0 %v973_v11  ;;  %883 = vmatprep.subr.bf16.mxu1 %v980_v26  ;;  %v990_v55 = vld [vmem:[#allocation3 + $0x18] sm:$0xff]   ;;  %v991_v56 = vld [vmem:[#allocation3 + $0x20] sm:$0xff]   ;;  %v992_v57 = vld [vmem:[#allocation3 + $0x28] sm:$0xff]  }
  0x20   :  { %855 = vmatprep.subr.bf16.mxu0 %v974_v14 }
  0x21   :  { %83 = vperm.xlu1 %970, %v50_v9   ;;  %80 = vperm.xlu0 %969, %v49_v10  }
  0x22   :  { %884 = vmatpush3.bf16.msra.mxu1 %v980_v26 }
  0x23   :  { %856 = vmatpush3.bf16.msra.mxu0 %v974_v14  ;;  %885 = vmatprep.subr.bf16.mxu1 %v981_v27 }
  0x24   :  { %857 = vmatprep.subr.bf16.mxu0 %v975_v17 }
  0x25   :  { %89 = vperm.xlu1 %970, %v52_v12   ;;  %86 = vperm.xlu0 %969, %v51_v13  }
  0x26   :  { %886 = vmatpush3.bf16.msra.mxu1 %v981_v27 }
  0x27   :  { %858 = vmatpush3.bf16.msra.mxu0 %v975_v17  ;;  %887 = vmatprep.subr.bf16.mxu1 %v982_v28 }
  0x28   :  { %859 = vmatprep.subr.bf16.mxu0 %v976_v20 }
  0x29   :  { %95 = vperm.xlu1 %970, %v54_v15   ;;  %92 = vperm.xlu0 %969, %v53_v16  }
  0x2a   :  { %888 = vmatpush3.bf16.msra.mxu1 %v982_v28 }
  0x2b   :  { %860 = vmatpush3.bf16.msra.mxu0 %v976_v20  ;;  %889 = vmatprep.subr.bf16.mxu1 %v983_v29  ;;  %v783_v20 = vld [vmem:[%s1215_s3] ss:$0 sm:$0xff] }
  0x2c   :  { %861 = vmatprep.subr.bf16.mxu0 %v977_v23 }
  0x2d   :  { %101 = vperm.xlu1 %970, %v56_v18   ;;  %98 = vperm.xlu0 %969, %v55_v19   ;;  %v993_v18 = vld [vmem:[#allocation3 + $0x30] sm:$0xff]   ;;  %v994_v19 = vld [vmem:[#allocation3 + $0x38] sm:$0xff]  }
  0x2e   :  { %890 = vmatpush3.bf16.msra.mxu1 %v983_v29 }
  0x2f   :  { %862 = vmatpush3.bf16.msra.mxu0 %v977_v23  ;;  %891 = vmatprep.subr.bf16.mxu1 %v984_v30 }
  0x30   :  { %863 = vmatprep.subr.bf16.mxu0 %v978_v24 }
  0x31   :  { %107 = vperm.xlu1 %970, %v58_v21   ;;  %104 = vperm.xlu0 %969, %v57_v22  }
  0x32   :  { %892 = vmatpush3.bf16.msra.mxu1 %v984_v30 }
  0x33   :  { %864 = vmatpush3.bf16.msra.mxu0 %v978_v24  ;;  %893 = vmatprep.subr.bf16.mxu1 %v985_v31 }
  0x34   :  { %913 = vmatprep.subr.bf16.mxu0 %v987_v52 }
  0x36   :  { %894 = vmatpush3.bf16.msra.mxu1 %v985_v31 }
  0x37   :  { %895 = vmatprep.subr.bf16.mxu1 %v986_v51 }
  0x3a   :  { %896 = vmatpush3.bf16.msra.mxu1 %v986_v51 }
  0x3b   :  { %945 = vmatprep.subr.bf16.mxu1 %v987_v52 }
  0x94   :  { %v69_v33 = vpop.permute.xlu1 %68  ;;  %v63_v34 = vpop.permute.xlu0 %62 }
  0x95   :  { %vm111_vm0 = vcmp.eq.s32.totalorder %v60_v35, %v69_v33  ;;  %vm109_vm3 = vcmp.eq.s32.totalorder %v60_v35, %v63_v34 }
  0x98   :  { %v72_v36 = vpop.permute.xlu1 %71  ;;  %v66_v37 = vpop.permute.xlu0 %65 }
  0x99   :  { %vm112_vm1 = vcmp.eq.s32.totalorder %v60_v35, %v72_v36  ;;  %vm110_vm2 = vcmp.eq.s32.totalorder %v60_v35, %v66_v37 }
  0x9a   :  { %vm769_vm4 = vmpackc.low %vm112_vm1, %vm111_vm0 }
  0x9b   :  { %vm767_vm5 = vmpackc.low %vm110_vm2, %vm109_vm3 }
  0x9c   :  { %865 = vmatprep.mubr.msk.bf16.mxu0 %vm767_vm5, %v1047_v38  ;;  %v78_v39 = vpop.permute.xlu1 %77  ;;  %v75_v40 = vpop.permute.xlu0 %74 }
  0x9d   :  { %vm114_vm6 = vcmp.eq.s32.totalorder %v60_v35, %v78_v39  ;;  %866 = vmatmul.mubr.msk.bf16.vlgmr.msra.gmra.mrb[0].mxu0 %vm769_vm4, %v1047_v38  ;;  %vm113_vm7 = vcmp.eq.s32.totalorder %v60_v35, %v75_v40 }
  0x9e   :  { %vm771_vm8 = vmpackc.low %vm114_vm6, %vm113_vm7  ;;  %914 = vmatpush3.bf16.msra.mxu0 %v987_v52 }
  0x9f   :  { %869 = vmatprep.mubr.msk.bf16.mxu0 %vm771_vm8, %v1047_v38  ;;  %915 = vmatprep.subr.bf16.mxu0 %v988_v53 }
  0xa0   :  { %v84_v41 = vpop.permute.xlu1 %83  ;;  %v81_v42 = vpop.permute.xlu0 %80 }
  0xa1   :  { %vm116_vm9 = vcmp.eq.s32.totalorder %v60_v35, %v84_v41  ;;  %vm115_vm10 = vcmp.eq.s32.totalorder %v60_v35, %v81_v42 }
  0xa2   :  { %vm773_vm11 = vmpackc.low %vm116_vm9, %vm115_vm10  ;;  %916 = vmatpush3.bf16.msra.mxu0 %v988_v53 }
  0xa3   :  { %917 = vmatprep.subr.bf16.mxu0 %v989_v54 }
  0xa4   :  { %v90_v43 = vpop.permute.xlu1 %89  ;;  %v87_v44 = vpop.permute.xlu0 %86 }
  0xa5   :  { %vm118_vm12 = vcmp.eq.s32.totalorder %v60_v35, %v90_v43  ;;  %870 = vmatmul.mubr.msk.bf16.gmra.mrb[4].mxu0 %vm773_vm11, %v1047_v38  ;;  %vm117_vm13 = vcmp.eq.s32.totalorder %v60_v35, %v87_v44 }
  0xa6   :  { %vm775_vm14 = vmpackc.low %vm118_vm12, %vm117_vm13  ;;  %918 = vmatpush3.bf16.msra.mxu0 %v989_v54 }
  0xa7   :  { %873 = vmatprep.mubr.msk.bf16.mxu0 %vm775_vm14, %v1047_v38  ;;  %919 = vmatprep.subr.bf16.mxu0 %v990_v55 }
  0xa8   :  { %v96_v45 = vpop.permute.xlu1 %95  ;;  %v93_v46 = vpop.permute.xlu0 %92 }
  0xa9   :  { %vm120_vm15 = vcmp.eq.s32.totalorder %v60_v35, %v96_v45  ;;  %vm119_vm0 = vcmp.eq.s32.totalorder %v60_v35, %v93_v46 }
  0xaa   :  { %vm777_vm1 = vmpackc.low %vm120_vm15, %vm119_vm0  ;;  %920 = vmatpush3.bf16.msra.mxu0 %v990_v55 }
  0xab   :  { %921 = vmatprep.subr.bf16.mxu0 %v991_v56 }
  0xac   :  { %v102_v47 = vpop.permute.xlu1 %101  ;;  %v99_v48 = vpop.permute.xlu0 %98 }
  0xad   :  { %vm122_vm2 = vcmp.eq.s32.totalorder %v60_v35, %v102_v47  ;;  %874 = vmatmul.mubr.msk.bf16.gmra.mrb[8].mxu0 %vm777_vm1, %v1047_v38  ;;  %vm121_vm3 = vcmp.eq.s32.totalorder %v60_v35, %v99_v48 }
  0xae   :  { %vm779_vm4 = vmpackc.low %vm122_vm2, %vm121_vm3  ;;  %922 = vmatpush3.bf16.msra.mxu0 %v991_v56 }
  0xaf   :  { %877 = vmatprep.mubr.msk.bf16.mxu0 %vm779_vm4, %v1047_v38  ;;  %923 = vmatprep.subr.bf16.mxu0 %v992_v57 }
  0xb0   :  { %v108_v49 = vpop.permute.xlu1 %107  ;;  %v105_v50 = vpop.permute.xlu0 %104 }
  0xb1   :  { %vm124_vm5 = vcmp.eq.s32.totalorder %v60_v35, %v108_v49  ;;  %vm123_vm6 = vcmp.eq.s32.totalorder %v60_v35, %v105_v50 }
  0xb2   :  { %vm781_vm7 = vmpackc.low %vm124_vm5, %vm123_vm6  ;;  %924 = vmatpush3.bf16.msra.mxu0 %v992_v57 }
  0xb3   :  { %925 = vmatprep.subr.bf16.mxu0 %v993_v18 }
  0xb5   :  { %878 = vmatmul.mubr.msk.bf16.gmra.mrb[12].mxu0 %vm781_vm7, %v1047_v38 }
  0xb6   :  { %926 = vmatpush3.bf16.msra.mxu0 %v993_v18 }
  0xb7   :  { %927 = vmatprep.subr.bf16.mxu0 %v994_v19 }
  0xba   :  { %928 = vmatpush3.bf16.msra.mxu0 %v994_v19 }
 0x170   :  { %v867_v58 = vpop.f32.mrb[0].mxu0 }
 0x171   :  { %v263_v59 = vpop.f32.mrb[1].mxu0 }
 0x172   :  { %v868_v60 = vpop.f32.mrb[2].mxu0 }
 0x173   :  { %v327_v61 = vpack.c.bf16 %v868_v60, %v867_v58  ;;  %v266_v62 = vpop.f32.mrb[3].mxu0 }
 0x174   :  { %v326_v63 = vpack.c.bf16 %v266_v62, %v263_v59 }
 0x176   :  { %897 = vmatprep.mubr.bf16.mxu1 %v326_v63 }
 0x177   :  { %898 = vmatmul.mubr.bf16.vlgmr.msra.gmra.mrb[0].mxu1 %v327_v61 }
 0x178   :  { %v871_v0 = vpop.f32.mrb[4].mxu0  ;;  %953 = vmatpush3.bf16.msra.mxu1 %v987_v52 }
 0x179   :  { %v279_v1 = vpop.f32.mrb[5].mxu0  ;;  %946 = vmatprep.subr.bf16.mxu1 %v988_v53 }
 0x17a   :  { %v872_v2 = vpop.f32.mrb[6].mxu0 }
 0x17b   :  { %v329_v3 = vpack.c.bf16 %v872_v2, %v871_v0  ;;  %v282_v4 = vpop.f32.mrb[7].mxu0 }
 0x17c   :  { %v328_v5 = vpack.c.bf16 %v282_v4, %v279_v1  ;;  %954 = vmatpush3.bf16.msra.mxu1 %v988_v53 }
 0x17d   :  { %947 = vmatprep.subr.bf16.mxu1 %v989_v54 }
 0x17e   :  { %901 = vmatprep.mubr.bf16.mxu1 %v328_v5 }
 0x17f   :  { %902 = vmatmul.mubr.bf16.gmra.mrb[4].mxu1 %v329_v3 }
 0x180   :  { %v875_v6 = vpop.f32.mrb[8].mxu0  ;;  %955 = vmatpush3.bf16.msra.mxu1 %v989_v54 }
 0x181   :  { %v295_v7 = vpop.f32.mrb[9].mxu0  ;;  %948 = vmatprep.subr.bf16.mxu1 %v990_v55 }
 0x182   :  { %v876_v8 = vpop.f32.mrb[10].mxu0 }
 0x183   :  { %v331_v9 = vpack.c.bf16 %v876_v8, %v875_v6  ;;  %v298_v10 = vpop.f32.mrb[11].mxu0 }
 0x184   :  { %v330_v11 = vpack.c.bf16 %v298_v10, %v295_v7  ;;  %956 = vmatpush3.bf16.msra.mxu1 %v990_v55 }
 0x185   :  { %949 = vmatprep.subr.bf16.mxu1 %v991_v56 }
 0x186   :  { %905 = vmatprep.mubr.bf16.mxu1 %v330_v11 }
 0x187   :  { %906 = vmatmul.mubr.bf16.gmra.mrb[8].mxu1 %v331_v9 }
 0x188   :  { %v879_v12 = vpop.f32.mrb[12].mxu0  ;;  %957 = vmatpush3.bf16.msra.mxu1 %v991_v56 }
 0x189   :  { %v311_v13 = vpop.f32.mrb[13].mxu0  ;;  %950 = vmatprep.subr.bf16.mxu1 %v992_v57 }
 0x18a   :  { %v880_v14 = vpop.f32.mrb[14].mxu0 }
 0x18b   :  { %v333_v15 = vpack.c.bf16 %v880_v14, %v879_v12  ;;  %v314_v16 = vpop.f32.mrb[15].mxu0 }
 0x18c   :  { %v332_v17 = vpack.c.bf16 %v314_v16, %v311_v13  ;;  %958 = vmatpush3.bf16.msra.mxu1 %v992_v57  ;;  %v792_v13 = vld [vmem:[%s1217_s5] ss:$0 sm:$0xff]  ;;  %s1048_s5 = smov [#allocation6]  }
 0x18d   :  { %951 = vmatprep.subr.bf16.mxu1 %v993_v18  ;;  %s731_s24 = sshll.u32 %s1048_s5, 4  ;;  %s732_s24 = int_to_ptr.vmem [resolvable:$true] %s731_s24 }
 0x18e   :  { %909 = vmatprep.mubr.bf16.mxu1 %v332_v17  ;;  %s1017_s25 = scalar_lea.vmem %s732_s24, 2048  ;;  %p1022_p9 = scmp.lt.s32.totalorder %s732_s24, %s732_s24 }
 0x18f   :  { %910 = vmatmul.mubr.bf16.gmra.mrb[12].mxu1 %v333_v15  ;;  %p1018_p8 = scmp.ne.s32.totalorder %s732_s24, %s1017_s25  ;;  %p1023_p10 = scmp.lt.s32.totalorder %s1017_s25, %s1017_s25 }
 0x190   :  { %959 = vmatpush3.bf16.msra.mxu1 %v993_v18 }
 0x191   :  { %952 = vmatprep.subr.bf16.mxu1 %v994_v19  ;;  %p1024_p11 = por %p1023_p10, %p1022_p9 }
 0x193   :  { %p1025_p12 = pnand %p1024_p11, %p1018_p8 }
 0x194   :  { %960 = vmatpush3.bf16.msra.mxu1 %v994_v19 }
 0x24a   :  { %v899_v21 = vpop.f32.mrb[0].mxu1 }
 0x24b   :  { %v448_v22 = vadd.f32 %v899_v21, %v783_v20  ;;  %v439_v23 = vpop.f32.mrb[1].mxu1 }
 0x24c   :  { %v440_v24 = vadd.f32 %v783_v20, %v439_v23  ;;  %v900_v25 = vpop.f32.mrb[2].mxu1 }
 0x24d   :  { %v451_v26 = vadd.f32 %v900_v25, %v783_v20  ;;  %v442_v27 = vpop.f32.mrb[3].mxu1  ;;  %v504_v29 = vmax.f32 %v448_v22, 0.0 }
 0x24e   :  { %v443_v28 = vadd.f32 %v783_v20, %v442_v27  ;;  %v502_v31 = vmax.f32 %v440_v24, 0.0 }
 0x24f   :  { %v505_v30 = vmax.f32 %v451_v26, 0.0 }
 0x250   :  { %v503_v32 = vmax.f32 %v443_v28, 0.0 }
 0x251   :  { %v519_v33 = vpack.c.bf16 %v505_v30, %v504_v29 }
 0x252   :  { %v518_v34 = vpack.c.bf16 %v503_v32, %v502_v31  ;;  %v903_v35 = vpop.f32.mrb[4].mxu1 }
 0x253   :  { %v464_v36 = vadd.f32 %v903_v35, %v783_v20  ;;  %v455_v37 = vpop.f32.mrb[5].mxu1 }
 0x254   :  { %v456_v38 = vadd.f32 %v783_v20, %v455_v37  ;;  %v904_v39 = vpop.f32.mrb[6].mxu1  ;;  %929 = vmatprep.mubr.bf16.mxu0 %v518_v34 }
 0x255   :  { %v467_v40 = vadd.f32 %v904_v39, %v783_v20  ;;  %v458_v41 = vpop.f32.mrb[7].mxu1  ;;  %930 = vmatmul.mubr.bf16.vlgmr.msra.gmra.mrb[16].mxu0 %v519_v33  ;;  %v508_v43 = vmax.f32 %v464_v36, 0.0 }
 0x256   :  { %v459_v42 = vadd.f32 %v783_v20, %v458_v41  ;;  %v506_v45 = vmax.f32 %v456_v38, 0.0 }
 0x257   :  { %v509_v44 = vmax.f32 %v467_v40, 0.0 }
 0x258   :  { %v507_v46 = vmax.f32 %v459_v42, 0.0 }
 0x259   :  { %v521_v47 = vpack.c.bf16 %v509_v44, %v508_v43 }
 0x25a   :  { %v520_v48 = vpack.c.bf16 %v507_v46, %v506_v45  ;;  %v907_v49 = vpop.f32.mrb[8].mxu1 }
 0x25b   :  { %v480_v50 = vadd.f32 %v907_v49, %v783_v20  ;;  %v471_v51 = vpop.f32.mrb[9].mxu1 }
 0x25c   :  { %v472_v52 = vadd.f32 %v783_v20, %v471_v51  ;;  %v908_v53 = vpop.f32.mrb[10].mxu1  ;;  %933 = vmatprep.mubr.bf16.mxu0 %v520_v48 }
 0x25d   :  { %v483_v54 = vadd.f32 %v908_v53, %v783_v20  ;;  %v474_v55 = vpop.f32.mrb[11].mxu1  ;;  %934 = vmatmul.mubr.bf16.gmra.mrb[20].mxu0 %v521_v47  ;;  %v512_v57 = vmax.f32 %v480_v50, 0.0 }
 0x25e   :  { %v475_v56 = vadd.f32 %v783_v20, %v474_v55  ;;  %v510_v59 = vmax.f32 %v472_v52, 0.0 }
 0x25f   :  { %v513_v58 = vmax.f32 %v483_v54, 0.0 }
 0x260   :  { %v511_v60 = vmax.f32 %v475_v56, 0.0 }
 0x261   :  { %v523_v61 = vpack.c.bf16 %v513_v58, %v512_v57 }
 0x262   :  { %v522_v62 = vpack.c.bf16 %v511_v60, %v510_v59  ;;  %v911_v63 = vpop.f32.mrb[12].mxu1 }
 0x263   :  { %v496_v0 = vadd.f32 %v911_v63, %v783_v20  ;;  %v487_v1 = vpop.f32.mrb[13].mxu1 }
 0x264   :  { %v488_v2 = vadd.f32 %v783_v20, %v487_v1  ;;  %v912_v3 = vpop.f32.mrb[14].mxu1  ;;  %937 = vmatprep.mubr.bf16.mxu1 %v522_v62 }
 0x265   :  { %v499_v4 = vadd.f32 %v912_v3, %v783_v20  ;;  %v490_v5 = vpop.f32.mrb[15].mxu1  ;;  %938 = vmatmul.mubr.bf16.vlgmr.msra.gmra.mrb[16].mxu1 %v523_v61  ;;  %v516_v7 = vmax.f32 %v496_v0, 0.0 }
 0x266   :  { %v491_v6 = vadd.f32 %v783_v20, %v490_v5  ;;  %v514_v9 = vmax.f32 %v488_v2, 0.0 }
 0x267   :  { %v517_v8 = vmax.f32 %v499_v4, 0.0 }
 0x268   :  { %v515_v10 = vmax.f32 %v491_v6, 0.0 }
 0x269   :  { %v525_v11 = vpack.c.bf16 %v517_v8, %v516_v7 }
 0x26a   :  { %v524_v12 = vpack.c.bf16 %v515_v10, %v514_v9 }
 0x26c   :  { %941 = vmatprep.mubr.bf16.mxu1 %v524_v12 }
 0x26d   :  { %942 = vmatmul.mubr.bf16.gmra.mrb[20].mxu1 %v525_v11 }
 0x328   :  { %v931_v14 = vpop.f32.mrb[16].mxu0 }
 0x329   :  { %v656_v15 = vadd.f32 %v931_v14, %v792_v13  ;;  %v647_v16 = vpop.f32.mrb[17].mxu0 }
 0x32a   :  { %v648_v17 = vadd.f32 %v792_v13, %v647_v16  ;;  %v932_v18 = vpop.f32.mrb[18].mxu0 }
 0x32b   :  { %712 = vst [vmem:[#allocation6 + $0x10] sm:$0xff] %v656_v15  ;;  %v659_v19 = vadd.f32 %v932_v18, %v792_v13  ;;  %v650_v20 = vpop.f32.mrb[19].mxu0 }
 0x32c   :  { %710 = vst [vmem:[#allocation6] sm:$0xff] %v648_v17  ;;  %v651_v21 = vadd.f32 %v792_v13, %v650_v20 }
 0x32d   :  { %713 = vst [vmem:[#allocation6 + $0x18] sm:$0xff] %v659_v19 }
 0x32e   :  { %711 = vst [vmem:[#allocation6 + $0x8] sm:$0xff] %v651_v21 }
 0x330   :  { %v935_v22 = vpop.f32.mrb[20].mxu0 }
 0x331   :  { %v672_v23 = vadd.f32 %v935_v22, %v792_v13  ;;  %v663_v24 = vpop.f32.mrb[21].mxu0 }
 0x332   :  { %v664_v25 = vadd.f32 %v792_v13, %v663_v24  ;;  %v936_v26 = vpop.f32.mrb[22].mxu0 }
 0x333   :  { %716 = vst [vmem:[#allocation6 + $0x30] sm:$0xff] %v672_v23  ;;  %v675_v27 = vadd.f32 %v936_v26, %v792_v13  ;;  %v666_v28 = vpop.f32.mrb[23].mxu0 }
 0x334   :  { %714 = vst [vmem:[#allocation6 + $0x20] sm:$0xff] %v664_v25  ;;  %v667_v29 = vadd.f32 %v792_v13, %v666_v28 }
 0x335   :  { %717 = vst [vmem:[#allocation6 + $0x38] sm:$0xff] %v675_v27 }
 0x336   :  { %715 = vst [vmem:[#allocation6 + $0x28] sm:$0xff] %v667_v29 }
 0x338   :  { %v939_v30 = vpop.f32.mrb[16].mxu1 }
 0x339   :  { %v688_v31 = vadd.f32 %v939_v30, %v792_v13  ;;  %v679_v32 = vpop.f32.mrb[17].mxu1 }
 0x33a   :  { %v680_v33 = vadd.f32 %v792_v13, %v679_v32  ;;  %v940_v34 = vpop.f32.mrb[18].mxu1 }
 0x33b   :  { %720 = vst [vmem:[#allocation6 + $0x50] sm:$0xff] %v688_v31  ;;  %v691_v35 = vadd.f32 %v940_v34, %v792_v13  ;;  %v682_v36 = vpop.f32.mrb[19].mxu1 }
 0x33c   :  { %718 = vst [vmem:[#allocation6 + $0x40] sm:$0xff] %v680_v33  ;;  %v683_v37 = vadd.f32 %v792_v13, %v682_v36 }
 0x33d   :  { %721 = vst [vmem:[#allocation6 + $0x58] sm:$0xff] %v691_v35 }
 0x33e   :  { %719 = vst [vmem:[#allocation6 + $0x48] sm:$0xff] %v683_v37 }
 0x340   :  { %v943_v38 = vpop.f32.mrb[20].mxu1 }
 0x341   :  { %v704_v39 = vadd.f32 %v943_v38, %v792_v13  ;;  %v695_v40 = vpop.f32.mrb[21].mxu1 }
 0x342   :  { %v696_v41 = vadd.f32 %v792_v13, %v695_v40  ;;  %v944_v42 = vpop.f32.mrb[22].mxu1 }
 0x343   :  { %724 = vst [vmem:[#allocation6 + $0x70] sm:$0xff] %v704_v39  ;;  %v707_v43 = vadd.f32 %v944_v42, %v792_v13  ;;  %v698_v44 = vpop.f32.mrb[23].mxu1 }
 0x344   :  { %722 = vst [vmem:[#allocation6 + $0x60] sm:$0xff] %v696_v41  ;;  %v699_v45 = vadd.f32 %v792_v13, %v698_v44 }
 0x345   :  { %725 = vst [vmem:[#allocation6 + $0x78] sm:$0xff] %v707_v43 }
 0x346   :  { %723 = vst [vmem:[#allocation6 + $0x68] sm:$0xff] %v699_v45 }
 0x347   :  { %1028 = shalt.err (!%p1025_p12)
}
 0x348   :  { %s1029_s28 = scalar_lea.hbm %s1218_s6, 2048 }
 0x349   :  { %p1030_p13 = scmp.ne.s32.totalorder %s1218_s6, %s1029_s28  ;;  %p1033_p0 = scmp.lt.u32.totalorder %s1029_s28, %s1218_s6 }
 0x34b   :  { %p1035_p1 = pnand %p1033_p0, %p1030_p13 }
 0x34d   :  { %1038 = shalt.err (!%p1035_p1)
}
 0x34e   :  { %s1049_s9 = smov 128   ;;  %s1050_s10 = smov 8  }
 0x34f   :  { %737 = dma.vmem_to_hbm [thread:$0]  %s732_s24, 2048, %s1218_s6, [#allocation5], %s1049_s9, %s1049_s9, %s1050_s10  }
 0x350   :  { %1041 = dma.done.wait [#allocation5], 2048  }
 0x351   :  { %1042 = vsyncadd [#allocation5], 4294965248 }
 0x352   :  { %741 = vsyncpa [#allocation4], 1 }
 0x353   :  { %742 = vsyncpa [#allocation5], 1 }

</bundles_post_ra>
